<compile_context>
chip_gen: v6e
topology: v6e:2x2x1
jax: 0.10.0
libtpu: 0.0.40
codegen_flags: <defaults>
</compile_context>

<pallas_src>
import jax
import jax.numpy as jnp
from jax.experimental import pallas as pl
from jax.experimental.pallas import tpu as pltpu

HIDDEN = 512      # ChannelAttention bottleneck width (fc1 out / fc2 in)
KSIZE = 7         # SpatialAttention kernel size
PAD = 3           # Conv1d padding for kernel_size=7


def _cbam_kernel(x_ref, w1_ref, w2_ref, taps_ref, o_ref):
    f32 = jnp.float32
    x = x_ref[...]                                   # (TB, C, T), native dtype
    TB, C, T = x.shape

    # ---------------- ChannelAttention ----------------
    # TODO(synk): on v7x the paired mean/max reductions could be fused into a
    # single sweep (fori_loop carrying both accumulators) to cut VMEM passes.
    avg = jnp.mean(x, axis=-1, dtype=f32)            # AdaptiveAvgPool1d(1) -> (TB, C)
    mx = jnp.max(x, axis=-1).astype(f32)             # AdaptiveMaxPool1d(1) -> (TB, C)

    # Batch both pooled vectors through one fc1/relu/fc2 pass (halves MXU ops).
    pooled = jnp.concatenate([avg, mx], axis=0)      # (2*TB, C)
    w1 = w1_ref[...]                                 # (C, HIDDEN)  == fc1.weight^T
    w2 = w2_ref[...]                                 # (HIDDEN, C)  == fc2.weight^T
    h = jnp.maximum(
        jnp.dot(pooled.astype(w1.dtype), w1, preferred_element_type=f32), 0.0)
    y = jnp.dot(h.astype(w2.dtype), w2, preferred_element_type=f32)   # (2*TB, C)
    ca = jax.nn.sigmoid(y[:TB] + y[TB:])             # (TB, C) channel gate
    x1 = x * ca[:, :, None].astype(x.dtype)          # channel-gated activations

    # ---------------- SpatialAttention ----------------
    avg_c = jnp.mean(x1, axis=1, dtype=f32)          # mean over channels -> (TB, T)
    max_c = jnp.max(x1, axis=1).astype(f32)          # max  over channels -> (TB, T)

    # Hoist the 14 SMEM scalar reads above the unrolled tap loop.
    t_avg = [taps_ref[0, k] for k in range(KSIZE)]
    t_max = [taps_ref[1, k] for k in range(KSIZE)]

    def shift(row, d):
        # y[:, t] = row[:, t + d], zero outside [0, T) (matches Conv1d pad=3).
        if d == 0:
            return row
        z = jnp.zeros((TB, abs(d)), row.dtype)
        if d > 0:
            return jnp.concatenate([row[:, d:], z], axis=-1)
        return jnp.concatenate([z, row[:, :T + d]], axis=-1)

    # Zero-padded Conv1d(2 -> 1, k=7, pad=3) as a 7-tap shifted accumulate,
    # fully in-register (no scratch buffers, no whole-row memsets).
    conv = jnp.zeros((TB, T), f32)
    for k in range(KSIZE):                           # static 7-tap unroll
        d = k - PAD
        conv = conv + t_avg[k] * shift(avg_c, d) + t_max[k] * shift(max_c, d)
    sa = jax.nn.sigmoid(conv).astype(x.dtype)        # (TB, T) spatial gate

    # CBAM.forward: x1 = input*ca ; x2 = x1*sa ; return input * x2.
    # Reuse the already-loaded x (no second read of x_ref).
    o_ref[...] = (x * (x1 * sa[:, None, :])).astype(o_ref.dtype)


def cbam(x, w_fc1, w_fc2, w_sa, *, block_b=None, vmem_limit_bytes=None):
    """x: (B, C, T); w_fc1: (512, C, 1); w_fc2: (C, 512, 1); w_sa: (1, 2, 7)."""
    B, C, T = x.shape
    hidden = w_fc1.shape[0]
    wdt = x.dtype   # keep weights in the activation dtype (bf16 in -> bf16 weights)
    w1t = jnp.transpose(w_fc1[:, :, 0]).astype(wdt)   # (C, hidden)
    w2t = jnp.transpose(w_fc2[:, :, 0]).astype(wdt)   # (hidden, C)
    taps = w_sa[0].astype(jnp.float32)                # (2, 7) conv taps

    # ---- generation-aware VMEM budget -------------------------------------
    if vmem_limit_bytes is None:
        try:
            cap = pltpu.get_tpu_info().vmem_capacity_bytes
        except Exception:
            cap = 64 * 1024 * 1024        # conservative (v7x-sized) fallback
        # Leave ~25% of physical VMEM for the compiler; never ask for > 64 MiB
        # (=> ~48 MiB on v7x's 64 MiB/TC, 64 MiB on v5e/v6e's 128 MiB).
        vmem_limit_bytes = int(min((cap * 3) // 4, 64 * 1024 * 1024))

    if block_b is None:
        itemsize = x.dtype.itemsize
        # VMEM residents besides the batch tiles: the two MLP weights
        # (double-buffered by the pipeline even with constant index maps),
        # plus a little slack for the SMEM taps / small temporaries.
        weight_bytes = 2 * 2 * C * hidden * jnp.dtype(wdt).itemsize
        tile_budget = max(vmem_limit_bytes - weight_bytes - (2 << 20), 1 << 20)
        # Per batch row: 2x double-buffered in + 2x out tiles plus ~3
        # tile-sized temporaries (x, x1, gated product) => ~7 (C, T) slabs.
        per_row = 7 * C * T * itemsize
        block_b = max(1, min(B, tile_budget // max(per_row, 1)))
        # Keep >= 2 grid steps whenever possible so ("parallel",) can shard
        # across both v7x TensorCores and the DMA pipeline has overlap.
        if B >= 2:
            block_b = min(block_b, pl.cdiv(B, 2))

    grid = (pl.cdiv(B, block_b),)

    return pl.pallas_call(
        _cbam_kernel,
        out_shape=jax.ShapeDtypeStruct((B, C, T), x.dtype),
        grid=grid,
        in_specs=[
            pl.BlockSpec((block_b, C, T), lambda b: (b, 0, 0)),
            pl.BlockSpec((C, hidden), lambda b: (0, 0)),        # VMEM-resident
            pl.BlockSpec((hidden, C), lambda b: (0, 0)),        #   across grid steps
            pl.BlockSpec(memory_space=pltpu.MemorySpace.SMEM),  # (2, 7) conv taps
        ],
        out_specs=pl.BlockSpec((block_b, C, T), lambda b: (b, 0, 0)),
        compiler_params=pltpu.CompilerParams(
            dimension_semantics=("parallel",),   # batch blocks are independent
            vmem_limit_bytes=vmem_limit_bytes),
    )(x, w1t, w2t, taps)


def cbam_ref(x, w_fc1, w_fc2, w_sa):
    """Pure-JAX reference mirroring the PyTorch forward exactly."""
    w1 = w_fc1[:, :, 0]                         # (512, C)
    w2 = w_fc2[:, :, 0]                         # (C, 512)

    avg = jnp.mean(x, axis=-1)
    mx = jnp.max(x, axis=-1)

    def mlp(v):
        return jnp.maximum(v @ w1.T, 0.0) @ w2.T

    ca = jax.nn.sigmoid(mlp(avg) + mlp(mx))[:, :, None]
    x1 = x * ca

    avg_c = jnp.mean(x1, axis=1)
    max_c = jnp.max(x1, axis=1)
    B, T = avg_c.shape
    pad = jnp.zeros((B, PAD), x.dtype)
    ap = jnp.concatenate([pad, avg_c, pad], axis=-1)
    mp = jnp.concatenate([pad, max_c, pad], axis=-1)
    conv = jnp.zeros((B, T), x.dtype)
    for k in range(KSIZE):
        conv = conv + w_sa[0, 0, k] * ap[:, k:k + T] + w_sa[0, 1, k] * mp[:, k:k + T]
    sa = jax.nn.sigmoid(conv)[:, None, :]
    x2 = x1 * sa
    return x * x2                                # matches PyTorch: input * x


if __name__ == "__main__":
    B, C, T = 2, 4, 16

    key = jax.random.PRNGKey(0)
    k1, k2, k3, kx = jax.random.split(key, 4)
    # Deterministic synthetic parameters (shapes from the module __init__).
    w_fc1 = jax.random.normal(k1, (HIDDEN, C, 1), jnp.float32) * 0.10   # Conv1d(C, 512, 1)
    w_fc2 = jax.random.normal(k2, (C, HIDDEN, 1), jnp.float32) * 0.05   # Conv1d(512, C, 1)
    w_sa = jax.random.normal(k3, (1, 2, KSIZE), jnp.float32) * 0.20     # Conv1d(2, 1, 7)
    x = jax.random.normal(kx, (B, C, T), jnp.float32)

    ref = cbam_ref(x, w_fc1, w_fc2, w_sa)

    # Auto-tiled path: heuristic picks block_b=1 here => grid=(2,), pipelined /
    # megacore-shardable.
    out = jax.block_until_ready(cbam(x, w_fc1, w_fc2, w_sa))
    assert out.shape == (B, C, T)
    assert jnp.allclose(out, ref, atol=2e-4, rtol=2e-4), \
        float(jnp.max(jnp.abs(out - ref)))

    # Also exercise the single-block path (grid=(1,), whole batch in one tile).
    out_one = jax.block_until_ready(cbam(x, w_fc1, w_fc2, w_sa, block_b=B))
    assert jnp.allclose(out_one, ref, atol=2e-4, rtol=2e-4), \
        float(jnp.max(jnp.abs(out_one - ref)))

    print("KERNEL_OK")
</pallas_src>

<mosaic_0001>
module attributes {stable_mosaic.version = 11 : i64} {
  func.func @_cbam_kernel(%arg0: i32, %arg1: memref<1x4x16xf32, #tpu.memory_space<vmem>>, %arg2: memref<4x512xf32, #tpu.memory_space<vmem>>, %arg3: memref<512x4xf32, #tpu.memory_space<vmem>>, %arg4: memref<2x7xf32, #tpu.memory_space<smem>>, %arg5: memref<1x4x16xf32, #tpu.memory_space<vmem>>) attributes {dimension_semantics = [#tpu.dimension_semantics<parallel>], iteration_bounds = array<i64: 2>, scalar_prefetch = 0 : i64, scratch_operands = 0 : i64, tpu.core_type = #tpu.core_type<tc>, window_params = [{transform_indices = @transform_0, window_bounds = array<i64: 1, 4, 16>}, {pipeline_mode = #tpu.pipeline_mode<synchronous>, transform_indices = @transform_1, window_bounds = array<i64: 4, 512>}, {pipeline_mode = #tpu.pipeline_mode<synchronous>, transform_indices = @transform_2, window_bounds = array<i64: 512, 4>}, {transform_indices = @transform_3, window_bounds = array<i64: 2, 7>}, {transform_indices = @transform_4, window_bounds = array<i64: 1, 4, 16>}]} {
    %c0 = arith.constant 0 : index
    %c0_0 = arith.constant 0 : index
    %c0_1 = arith.constant 0 : index
    %0 = vector.load %arg1[%c0, %c0_0, %c0_1] : memref<1x4x16xf32, #tpu.memory_space<vmem>>, vector<1x4x16xf32>
    %cst = arith.constant dense<0.000000e+00> : vector<1x4xf32>
    %1 = vector.multi_reduction <add>, %0, %cst [2] : vector<1x4x16xf32> to vector<1x4xf32>
    %cst_2 = arith.constant 1.600000e+01 : f32
    %2 = vector.broadcast %cst_2 : f32 to vector<1x4xf32>
    %3 = arith.divf %1, %2 : vector<1x4xf32>
    %cst_3 = arith.constant dense<0xFF800000> : vector<1x4xf32>
    %4 = vector.multi_reduction <maximumf>, %0, %cst_3 [2] : vector<1x4x16xf32> to vector<1x4xf32>
    %5 = tpu.concatenate %3, %4 in 0 : vector<1x4xf32>, vector<1x4xf32> -> vector<2x4xf32>
    %c0_4 = arith.constant 0 : index
    %c0_5 = arith.constant 0 : index
    %6 = vector.load %arg2[%c0_4, %c0_5] : memref<4x512xf32, #tpu.memory_space<vmem>>, vector<4x512xf32>
    %c0_6 = arith.constant 0 : index
    %c0_7 = arith.constant 0 : index
    %7 = vector.load %arg3[%c0_6, %c0_7] : memref<512x4xf32, #tpu.memory_space<vmem>>, vector<512x4xf32>
    %cst_8 = arith.constant dense<0.000000e+00> : vector<2x512xf32>
    %8 = tpu.matmul %5, %6, %cst_8 {dimension_numbers = #tpu.dot_dimension_numbers<[1], [0], [0], [1], [0, 0, 1, 1], [], []>} : vector<2x4xf32>, vector<4x512xf32>, vector<2x512xf32> -> vector<2x512xf32>
    %cst_9 = arith.constant 0.000000e+00 : f32
    %9 = vector.broadcast %cst_9 : f32 to vector<2x512xf32>
    %10 = arith.maximumf %8, %9 : vector<2x512xf32>
    %cst_10 = arith.constant dense<0.000000e+00> : vector<2x4xf32>
    %11 = tpu.matmul %10, %7, %cst_10 {dimension_numbers = #tpu.dot_dimension_numbers<[1], [0], [0], [1], [0, 0, 1, 1], [], []>} : vector<2x512xf32>, vector<512x4xf32>, vector<2x4xf32> -> vector<2x4xf32>
    %12 = vector.extract_strided_slice %11 {offsets = [0, 0], sizes = [1, 4], strides = [1, 1]} : vector<2x4xf32> to vector<1x4xf32>
    %13 = vector.extract_strided_slice %11 {offsets = [1, 0], sizes = [1, 4], strides = [1, 1]} : vector<2x4xf32> to vector<1x4xf32>
    %14 = arith.addf %12, %13 : vector<1x4xf32>
    %15 = arith.negf %14 : vector<1x4xf32>
    %16 = math.exp %15 : vector<1x4xf32>
    %cst_11 = arith.constant 1.000000e+00 : f32
    %17 = vector.broadcast %cst_11 : f32 to vector<1x4xf32>
    %18 = arith.addf %17, %16 : vector<1x4xf32>
    %19 = arith.divf %17, %18 : vector<1x4xf32>
    %20 = vector.shape_cast %19 : vector<1x4xf32> to vector<1x4x1xf32>
    %21 = vector.broadcast %20 : vector<1x4x1xf32> to vector<1x4x16xf32>
    %22 = arith.mulf %0, %21 : vector<1x4x16xf32>
    %cst_12 = arith.constant dense<0.000000e+00> : vector<1x16xf32>
    %23 = vector.multi_reduction <add>, %22, %cst_12 [1] : vector<1x4x16xf32> to vector<1x16xf32>
    %cst_13 = arith.constant 4.000000e+00 : f32
    %24 = vector.broadcast %cst_13 : f32 to vector<1x16xf32>
    %25 = arith.divf %23, %24 : vector<1x16xf32>
    %cst_14 = arith.constant dense<0xFF800000> : vector<1x16xf32>
    %26 = vector.multi_reduction <maximumf>, %22, %cst_14 [1] : vector<1x4x16xf32> to vector<1x16xf32>
    %c0_15 = arith.constant 0 : index
    %c0_16 = arith.constant 0 : index
    %27 = memref.load %arg4[%c0_15, %c0_16] : memref<2x7xf32, #tpu.memory_space<smem>>
    %c0_17 = arith.constant 0 : index
    %c1 = arith.constant 1 : index
    %28 = memref.load %arg4[%c0_17, %c1] : memref<2x7xf32, #tpu.memory_space<smem>>
    %c0_18 = arith.constant 0 : index
    %c2 = arith.constant 2 : index
    %29 = memref.load %arg4[%c0_18, %c2] : memref<2x7xf32, #tpu.memory_space<smem>>
    %c0_19 = arith.constant 0 : index
    %c3 = arith.constant 3 : index
    %30 = memref.load %arg4[%c0_19, %c3] : memref<2x7xf32, #tpu.memory_space<smem>>
    %c0_20 = arith.constant 0 : index
    %c4 = arith.constant 4 : index
    %31 = memref.load %arg4[%c0_20, %c4] : memref<2x7xf32, #tpu.memory_space<smem>>
    %c0_21 = arith.constant 0 : index
    %c5 = arith.constant 5 : index
    %32 = memref.load %arg4[%c0_21, %c5] : memref<2x7xf32, #tpu.memory_space<smem>>
    %c0_22 = arith.constant 0 : index
    %c6 = arith.constant 6 : index
    %33 = memref.load %arg4[%c0_22, %c6] : memref<2x7xf32, #tpu.memory_space<smem>>
    %c1_23 = arith.constant 1 : index
    %c0_24 = arith.constant 0 : index
    %34 = memref.load %arg4[%c1_23, %c0_24] : memref<2x7xf32, #tpu.memory_space<smem>>
    %c1_25 = arith.constant 1 : index
    %c1_26 = arith.constant 1 : index
    %35 = memref.load %arg4[%c1_25, %c1_26] : memref<2x7xf32, #tpu.memory_space<smem>>
    %c1_27 = arith.constant 1 : index
    %c2_28 = arith.constant 2 : index
    %36 = memref.load %arg4[%c1_27, %c2_28] : memref<2x7xf32, #tpu.memory_space<smem>>
    %c1_29 = arith.constant 1 : index
    %c3_30 = arith.constant 3 : index
    %37 = memref.load %arg4[%c1_29, %c3_30] : memref<2x7xf32, #tpu.memory_space<smem>>
    %c1_31 = arith.constant 1 : index
    %c4_32 = arith.constant 4 : index
    %38 = memref.load %arg4[%c1_31, %c4_32] : memref<2x7xf32, #tpu.memory_space<smem>>
    %c1_33 = arith.constant 1 : index
    %c5_34 = arith.constant 5 : index
    %39 = memref.load %arg4[%c1_33, %c5_34] : memref<2x7xf32, #tpu.memory_space<smem>>
    %c1_35 = arith.constant 1 : index
    %c6_36 = arith.constant 6 : index
    %40 = memref.load %arg4[%c1_35, %c6_36] : memref<2x7xf32, #tpu.memory_space<smem>>
    %cst_37 = arith.constant 0.000000e+00 : f32
    %41 = vector.broadcast %cst_37 : f32 to vector<1x16xf32>
    %cst_38 = arith.constant 0.000000e+00 : f32
    %42 = vector.broadcast %cst_38 : f32 to vector<1x3xf32>
    %43 = vector.extract_strided_slice %25 {offsets = [0, 0], sizes = [1, 13], strides = [1, 1]} : vector<1x16xf32> to vector<1x13xf32>
    %44 = tpu.concatenate %42, %43 in 1 : vector<1x3xf32>, vector<1x13xf32> -> vector<1x16xf32>
    %45 = vector.broadcast %27 : f32 to vector<1x16xf32>
    %46 = arith.mulf %45, %44 : vector<1x16xf32>
    %47 = arith.addf %41, %46 : vector<1x16xf32>
    %cst_39 = arith.constant 0.000000e+00 : f32
    %48 = vector.broadcast %cst_39 : f32 to vector<1x3xf32>
    %49 = vector.extract_strided_slice %26 {offsets = [0, 0], sizes = [1, 13], strides = [1, 1]} : vector<1x16xf32> to vector<1x13xf32>
    %50 = tpu.concatenate %48, %49 in 1 : vector<1x3xf32>, vector<1x13xf32> -> vector<1x16xf32>
    %51 = vector.broadcast %34 : f32 to vector<1x16xf32>
    %52 = arith.mulf %51, %50 : vector<1x16xf32>
    %53 = arith.addf %47, %52 : vector<1x16xf32>
    %cst_40 = arith.constant 0.000000e+00 : f32
    %54 = vector.broadcast %cst_40 : f32 to vector<1x2xf32>
    %55 = vector.extract_strided_slice %25 {offsets = [0, 0], sizes = [1, 14], strides = [1, 1]} : vector<1x16xf32> to vector<1x14xf32>
    %56 = tpu.concatenate %54, %55 in 1 : vector<1x2xf32>, vector<1x14xf32> -> vector<1x16xf32>
    %57 = vector.broadcast %28 : f32 to vector<1x16xf32>
    %58 = arith.mulf %57, %56 : vector<1x16xf32>
    %59 = arith.addf %53, %58 : vector<1x16xf32>
    %cst_41 = arith.constant 0.000000e+00 : f32
    %60 = vector.broadcast %cst_41 : f32 to vector<1x2xf32>
    %61 = vector.extract_strided_slice %26 {offsets = [0, 0], sizes = [1, 14], strides = [1, 1]} : vector<1x16xf32> to vector<1x14xf32>
    %62 = tpu.concatenate %60, %61 in 1 : vector<1x2xf32>, vector<1x14xf32> -> vector<1x16xf32>
    %63 = vector.broadcast %35 : f32 to vector<1x16xf32>
    %64 = arith.mulf %63, %62 : vector<1x16xf32>
    %65 = arith.addf %59, %64 : vector<1x16xf32>
    %cst_42 = arith.constant 0.000000e+00 : f32
    %66 = vector.broadcast %cst_42 : f32 to vector<1x1xf32>
    %67 = vector.extract_strided_slice %25 {offsets = [0, 0], sizes = [1, 15], strides = [1, 1]} : vector<1x16xf32> to vector<1x15xf32>
    %68 = tpu.concatenate %66, %67 in 1 : vector<1x1xf32>, vector<1x15xf32> -> vector<1x16xf32>
    %69 = vector.broadcast %29 : f32 to vector<1x16xf32>
    %70 = arith.mulf %69, %68 : vector<1x16xf32>
    %71 = arith.addf %65, %70 : vector<1x16xf32>
    %cst_43 = arith.constant 0.000000e+00 : f32
    %72 = vector.broadcast %cst_43 : f32 to vector<1x1xf32>
    %73 = vector.extract_strided_slice %26 {offsets = [0, 0], sizes = [1, 15], strides = [1, 1]} : vector<1x16xf32> to vector<1x15xf32>
    %74 = tpu.concatenate %72, %73 in 1 : vector<1x1xf32>, vector<1x15xf32> -> vector<1x16xf32>
    %75 = vector.broadcast %36 : f32 to vector<1x16xf32>
    %76 = arith.mulf %75, %74 : vector<1x16xf32>
    %77 = arith.addf %71, %76 : vector<1x16xf32>
    %78 = vector.broadcast %30 : f32 to vector<1x16xf32>
    %79 = arith.mulf %78, %25 : vector<1x16xf32>
    %80 = arith.addf %77, %79 : vector<1x16xf32>
    %81 = vector.broadcast %37 : f32 to vector<1x16xf32>
    %82 = arith.mulf %81, %26 : vector<1x16xf32>
    %83 = arith.addf %80, %82 : vector<1x16xf32>
    %cst_44 = arith.constant 0.000000e+00 : f32
    %84 = vector.broadcast %cst_44 : f32 to vector<1x1xf32>
    %85 = vector.extract_strided_slice %25 {offsets = [0, 1], sizes = [1, 15], strides = [1, 1]} : vector<1x16xf32> to vector<1x15xf32>
    %86 = tpu.concatenate %85, %84 in 1 : vector<1x15xf32>, vector<1x1xf32> -> vector<1x16xf32>
    %87 = vector.broadcast %31 : f32 to vector<1x16xf32>
    %88 = arith.mulf %87, %86 : vector<1x16xf32>
    %89 = arith.addf %83, %88 : vector<1x16xf32>
    %cst_45 = arith.constant 0.000000e+00 : f32
    %90 = vector.broadcast %cst_45 : f32 to vector<1x1xf32>
    %91 = vector.extract_strided_slice %26 {offsets = [0, 1], sizes = [1, 15], strides = [1, 1]} : vector<1x16xf32> to vector<1x15xf32>
    %92 = tpu.concatenate %91, %90 in 1 : vector<1x15xf32>, vector<1x1xf32> -> vector<1x16xf32>
    %93 = vector.broadcast %38 : f32 to vector<1x16xf32>
    %94 = arith.mulf %93, %92 : vector<1x16xf32>
    %95 = arith.addf %89, %94 : vector<1x16xf32>
    %cst_46 = arith.constant 0.000000e+00 : f32
    %96 = vector.broadcast %cst_46 : f32 to vector<1x2xf32>
    %97 = vector.extract_strided_slice %25 {offsets = [0, 2], sizes = [1, 14], strides = [1, 1]} : vector<1x16xf32> to vector<1x14xf32>
    %98 = tpu.concatenate %97, %96 in 1 : vector<1x14xf32>, vector<1x2xf32> -> vector<1x16xf32>
    %99 = vector.broadcast %32 : f32 to vector<1x16xf32>
    %100 = arith.mulf %99, %98 : vector<1x16xf32>
    %101 = arith.addf %95, %100 : vector<1x16xf32>
    %cst_47 = arith.constant 0.000000e+00 : f32
    %102 = vector.broadcast %cst_47 : f32 to vector<1x2xf32>
    %103 = vector.extract_strided_slice %26 {offsets = [0, 2], sizes = [1, 14], strides = [1, 1]} : vector<1x16xf32> to vector<1x14xf32>
    %104 = tpu.concatenate %103, %102 in 1 : vector<1x14xf32>, vector<1x2xf32> -> vector<1x16xf32>
    %105 = vector.broadcast %39 : f32 to vector<1x16xf32>
    %106 = arith.mulf %105, %104 : vector<1x16xf32>
    %107 = arith.addf %101, %106 : vector<1x16xf32>
    %cst_48 = arith.constant 0.000000e+00 : f32
    %108 = vector.broadcast %cst_48 : f32 to vector<1x3xf32>
    %109 = vector.extract_strided_slice %25 {offsets = [0, 3], sizes = [1, 13], strides = [1, 1]} : vector<1x16xf32> to vector<1x13xf32>
    %110 = tpu.concatenate %109, %108 in 1 : vector<1x13xf32>, vector<1x3xf32> -> vector<1x16xf32>
    %111 = vector.broadcast %33 : f32 to vector<1x16xf32>
    %112 = arith.mulf %111, %110 : vector<1x16xf32>
    %113 = arith.addf %107, %112 : vector<1x16xf32>
    %cst_49 = arith.constant 0.000000e+00 : f32
    %114 = vector.broadcast %cst_49 : f32 to vector<1x3xf32>
    %115 = vector.extract_strided_slice %26 {offsets = [0, 3], sizes = [1, 13], strides = [1, 1]} : vector<1x16xf32> to vector<1x13xf32>
    %116 = tpu.concatenate %115, %114 in 1 : vector<1x13xf32>, vector<1x3xf32> -> vector<1x16xf32>
    %117 = vector.broadcast %40 : f32 to vector<1x16xf32>
    %118 = arith.mulf %117, %116 : vector<1x16xf32>
    %119 = arith.addf %113, %118 : vector<1x16xf32>
    %120 = arith.negf %119 : vector<1x16xf32>
    %121 = math.exp %120 : vector<1x16xf32>
    %cst_50 = arith.constant 1.000000e+00 : f32
    %122 = vector.broadcast %cst_50 : f32 to vector<1x16xf32>
    %123 = arith.addf %122, %121 : vector<1x16xf32>
    %124 = arith.divf %122, %123 : vector<1x16xf32>
    %125 = vector.shape_cast %124 : vector<1x16xf32> to vector<1x1x16xf32>
    %126 = vector.broadcast %125 : vector<1x1x16xf32> to vector<1x4x16xf32>
    %127 = arith.mulf %22, %126 : vector<1x4x16xf32>
    %128 = arith.mulf %0, %127 : vector<1x4x16xf32>
    %c0_51 = arith.constant 0 : index
    %c0_52 = arith.constant 0 : index
    %c0_53 = arith.constant 0 : index
    %129 = vector.load %arg5[%c0_51, %c0_52, %c0_53] : memref<1x4x16xf32, #tpu.memory_space<vmem>>, vector<1x4x16xf32>
    tpu.vector_store %arg5[%c0_51, %c0_52, %c0_53], %128 {strides = array<i32>} : memref<1x4x16xf32, #tpu.memory_space<vmem>>, vector<1x4x16xf32>,
    return
  }
  func.func @transform_0(%arg0: i32) -> (i32, i32, i32) {
    %c0_i32 = arith.constant 0 : i32
    %c0_i32_0 = arith.constant 0 : i32
    %c0_i32_1 = arith.constant 0 : i32
    return %arg0, %c0_i32, %c0_i32_0 : i32, i32, i32
  }
  func.func @transform_1(%arg0: i32) -> (i32, i32) {
    %c0_i32 = arith.constant 0 : i32
    %c0_i32_0 = arith.constant 0 : i32
    %c0_i32_1 = arith.constant 0 : i32
    return %c0_i32, %c0_i32_0 : i32, i32
  }
  func.func @transform_2(%arg0: i32) -> (i32, i32) {
    %c0_i32 = arith.constant 0 : i32
    %c0_i32_0 = arith.constant 0 : i32
    %c0_i32_1 = arith.constant 0 : i32
    return %c0_i32, %c0_i32_0 : i32, i32
  }
  func.func @transform_3(%arg0: i32) -> (i32, i32) {
    %c0_i32 = arith.constant 0 : i32
    %c0_i32_0 = arith.constant 0 : i32
    %c0_i32_1 = arith.constant 0 : i32
    return %c0_i32, %c0_i32_0 : i32, i32
  }
  func.func @transform_4(%arg0: i32) -> (i32, i32, i32) {
    %c0_i32 = arith.constant 0 : i32
    %c0_i32_0 = arith.constant 0 : i32
    %c0_i32_1 = arith.constant 0 : i32
    return %arg0, %c0_i32, %c0_i32_0 : i32, i32, i32
  }
}

</mosaic_0001>

<bundles_post_ra>
// kernel: tpu_custom_call.1
= control target key start
LH: loop header
LB: loop body
LE: loop exit
PB: predicated region body
PF: predicated region fallthrough
CT: control target
= control target key end

     0   :  { %9 = vsyncpa [#allocation4], 0  ;;  %s1491_s0 = inlined_call_operand.vmem [shape: f32[2,4,16], index: 0, kind: input, shape index: {}]   ;;  %s1492_s1 = inlined_call_operand.vmem [shape: f32[4,512], index: 1, kind: input, shape index: {}]   ;;  %s1493_s2 = inlined_call_operand.vmem [shape: f32[512,4], index: 2, kind: input, shape index: {}]   ;;  %s1494_s3 = inlined_call_operand.vmem [shape: f32[2,7], index: 3, kind: input, shape index: {}]   ;;  %s1495_s4 = inlined_call_operand.hbm [shape: f32[2,4,16], index: 4, kind: output, shape index: {}]  }
   0x1   :  { %10 = vsyncpa [#allocation3], 0 }
   0x2   :  { %12 = vsyncpa [#allocation3 + $0x1], 0  ;;  %s1131_s15 = smov 0   ;;  %s1133_s16 = smov 0  }
   0x3   :  { %s1135_s17 = smov 0   ;;  %s1137_s18 = smov 0  }
   0x4 LB: > { %s1152_s19 = sadd.s32 4294967295, %s1095_s18   ;;  %s846_s20 = sadd.s32 4294967294, %s1095_s18   ;;  %s1095_s18 = sphi %s1137_s18, %s1502_s18   ;;  %s1091_s17 = sphi %s1135_s17, %s1501_s17   ;;  %s1087_s16 = sphi %s1133_s16, %s1500_s16   ;;  %s1083_s15 = sphi %s1131_s15, %s1499_s15  }
   0x5   : > { %s1156_s21 = sadd.s32 1, %s1095_s18   ;;  %s114_s22 = sadd.s32 1, %s1091_s17 }
   0x6   : > { %s111_s23 = ssub.s32 %s1095_s18, %s1156_s21  ;;  %p124_p0 = scmp.ne.s32.totalorder %s1091_s17, %s1087_s16 }
   0x7   : > { %p112_p1 = scmp.eq.s32.totalorder %s111_s23, 0  ;;  %p125_p2 = scmp.eq.s32.totalorder %s1152_s19, 1 }
   0x8   : > { %p130_p3 = scmp.ne.s32.totalorder %s1087_s16, %s1083_s15  ;;  %p131_p4 = scmp.eq.s32.totalorder %s846_s20, 1 }
   0x9   : > { %s1167_s24 = scalar_select %p112_p1, %s1091_s17, %s114_s22  }
   0xa   : > { %p1169_p5 = por %p125_p2, %p124_p0  ;;  %p1173_p6 = por %p131_p4, %p130_p3 }
   0xb   : > { %p847_p7 = scmp.ge.s32.totalorder %s1095_s18, 1  ;;  %p138_p8 = scmp.lt.s32.totalorder %s1095_s18, 3 }
   0xc   : > { %p963_p9 = scmp.eq.s32.totalorder %s1152_s19, 0  ;;  %s157_s30 = sshll.u32 %s1494_s3, 4  ;;  %s158_s30 = int_to_ptr.vmem [resolvable:$true] %s157_s30 }
   0xd   : > { %p1180_p10 = pnand %p847_p7, %p138_p8  ;;  %s1016_s5 = scalar_lea.vmem %s158_s30, 32 }
   0xe   : > { %p1017_p13 = scmp.ne.s32.totalorder %s158_s30, %s1016_s5  ;;  %p1024_p3 = scmp.lt.s32.totalorder %s158_s30, %s158_s30 }
   0xf   : > { %p955_p11 = pneg %p1180_p10  ;;  %p1025_p4 = scmp.lt.s32.totalorder %s1016_s5, %s1016_s5 }
  0x11   : > { %p956_p12 = pnand %p963_p9, %p955_p11  ;;  %p1026_p7 = por %p1025_p4, %p1024_p3 }
  0x13   : > { %p1018_p0 = pneg %p956_p12 }
  0x15   : > { %p1019_p1 = pnand %p1018_p0, %p1017_p13 }
  0x17   : > { %p1020_p2 = pneg %p1019_p1 }
  0x19   : > { %p1027_p8 = pnand %p1026_p7, %p1020_p2 }
  0x1b   : > { %1030 = shalt.err (!%p1027_p8)
}
  0x1c   : > { %s1097_s6 = smov [#allocation2]   ;;  %177 = sbr.rel (%p1180_p10) target bundleno = 957 (0x3bd), region = 36 }
  0x1d   : > { %958 = dma.vmem_to_smem (!%p956_p12), %s158_s30, 32, %s1097_s6, [#allocation4]  }
  0x21   : > { %1074 = dma.done.wait (%p963_p9), [#allocation4], 32  }
  0x22   : > { %1076 = vsyncadd (%p963_p9), [#allocation4], 4294967264 }
  0x23   : > { %183 = sfence }
  0x24   : > { %p203_p11 = scmp.lt.s32.totalorder %s1152_s19, 1  ;;  %vm208_vm0 = vcmask 125952   ;;  %v233_v3 = vld [vmem:[%s1492_s1] sm:$0xff]  ;;  %v234_v4 = vld [vmem:[%s1492_s1 + $0x8] sm:$0xff]  ;;  %vm307_vm1 = vcmask 1043456   ;;  %v1098_v7 = vmov 0.0   ;;  %v218_v10 = vlaneseq }
  0x25   : > { %v301_v5 = vcombine.high %v233_v3, %v233_v3  ;;  %v302_v6 = vcombine.high %v234_v4, %v234_v4  ;;  %380 = vmatprep.mubr.f32.mxu0 %v1098_v7  ;;  %451 = vmatprep.mubr.f32.mxu1 %v1098_v7  ;;  %v266_v8 = vld [vmem:[%s1493_s2 + $0xf8] sm:$0xff]  ;;  %vm231_vm2 = vcmask 1040384   ;;  %vm303_vm3 = vcmask 31744   ;;  %v265_v22 = vld [vmem:[%s1493_s2 + $0xf0] sm:$0xff]  ;;  %v264_v26 = vld [vmem:[%s1493_s2 + $0xe8] sm:$0xff]  ;;  %s1100_s9 = smov 3  }
  0x26   : > { %s204_s7 = scalar_select %p203_p11, %s1152_s19, 1  ;;  %v298_v9 = vld [vmem:[%s1493_s2 + $0x1f8] sm:$0xff]  ;;  %v219_v11 = vand.u32 127, %v218_v10  ;;  %v1220_v12 = vshrl.u32 %v218_v10, 7  ;;  %v297_v23 = vld [vmem:[%s1493_s2 + $0x1f0] sm:$0xff]  ;;  %v296_v27 = vld [vmem:[%s1493_s2 + $0x1e8] sm:$0xff] }
  0x27   : > { %854 = vmatprep.subr.msk.mxu0 %vm307_vm1, %v301_v5  ;;  %857 = vmatprep.subr.msk.mxu1 %vm307_vm1, %v302_v6  ;;  %v250_v19 = vld [vmem:[%s1493_s2 + $0x78] sm:$0xff]  ;;  %v249_v24 = vld [vmem:[%s1493_s2 + $0x70] sm:$0xff]  ;;  %v248_v28 = vld [vmem:[%s1493_s2 + $0x68] sm:$0xff]  ;;  %s1101_s10 = smov 126   ;;  %s1103_s12 = smov 1   ;;  %vm654_vm4 = vcmask 23552  }
  0x28   : > { %s853_s8 = sshll.u32 %s204_s7, 2  ;;  %855 = vmatpush1.msk.msra.mxu0 %vm307_vm1, %v233_v3  ;;  %858 = vmatpush1.msk.msra.mxu1 %vm307_vm1, %v234_v4  ;;  %v222_v14 = vsub.s32 %v219_v11, %v1220_v12  ;;  %v282_v20 = vld [vmem:[%s1493_s2 + $0x178] sm:$0xff]  ;;  %v281_v25 = vld [vmem:[%s1493_s2 + $0x170] sm:$0xff]  ;;  %v280_v29 = vld [vmem:[%s1493_s2 + $0x168] sm:$0xff]  ;;  %s1104_s13 = smov 127   ;;  %vm670_vm5 = vcmask 15360  }
  0x29   : > { %s206_s11 = scalar_lea.vmem %s1491_s0, %s853_s8  ;;  %879 = vmatprep.subr.mxu0 %v266_v8  ;;  %914 = vmatprep.subr.mxu1 %v298_v9  ;;  %v263_v30 = vld [vmem:[%s1493_s2 + $0xe0] sm:$0xff]  ;;  %v262_v34 = vld [vmem:[%s1493_s2 + $0xd8] sm:$0xff]  ;;  %v261_v38 = vld [vmem:[%s1493_s2 + $0xd0] sm:$0xff]  ;;  %s1099_s8 = smov 2   ;;  %vm685_vm6 = vcmask 7168   ;;  %vm706_vm7 = vcmask 121856  }
  0x2a   : > { %v1202_v0 = vld [vmem:[%s206_s11] sm:$0xf]  ;;  %v294_v35 = vld [vmem:[%s1493_s2 + $0x1d8] sm:$0xff]  ;;  %v293_v39 = vld [vmem:[%s1493_s2 + $0x1d0] sm:$0xff]  ;;  %s1102_s11 = smov 125   ;;  %s636_s14 = sld [smem:[#allocation2]] }
  0x2b   : > { %v209_v1 = vsel %vm208_vm0, %v1202_v0, 0.0  ;;  %v214_v2 = vsel %vm208_vm0, %v1202_v0, -inf  ;;  %v295_v31 = vld [vmem:[%s1493_s2 + $0x1e0] sm:$0xff]  ;;  %v246_v36 = vld [vmem:[%s1493_s2 + $0x58] sm:$0xff]  ;;  %v245_v40 = vld [vmem:[%s1493_s2 + $0x50] sm:$0xff]  ;;  %s867_s20 = sld [smem:[#allocation2 + $0x80]] }
  0x2c   : > { %210 = vadd.xlane.f32.xlu0 %v209_v1  ;;  %v247_v32 = vld [vmem:[%s1493_s2 + $0x60] sm:$0xff]  ;;  %v278_v37 = vld [vmem:[%s1493_s2 + $0x158] sm:$0xff]  ;;  %v277_v41 = vld [vmem:[%s1493_s2 + $0x150] sm:$0xff]  ;;  %s861_s22 = sld [smem:[#allocation2 + $0x1]]  ;;  %vm721_vm8 = vcmask 113664   ;;  %vm736_vm9 = vcmask 105472  }
  0x2d   : > { %v279_v33 = vld [vmem:[%s1493_s2 + $0x160] sm:$0xff]  ;;  %v260_v42 = vld [vmem:[%s1493_s2 + $0xc8] sm:$0xff]  ;;  %v258_v50 = vld [vmem:[%s1493_s2 + $0xb8] sm:$0xff]  ;;  %s868_s23 = sld [smem:[#allocation2 + $0x81]] }
  0x2e   : > { %v292_v43 = vld [vmem:[%s1493_s2 + $0x1c8] sm:$0xff]  ;;  %v259_v46 = vld [vmem:[%s1493_s2 + $0xc0] sm:$0xff]  ;;  %v290_v51 = vld [vmem:[%s1493_s2 + $0x1b8] sm:$0xff]  ;;  %s862_s27 = sld [smem:[#allocation2 + $0x2]] }
  0x2f   : > { %v244_v44 = vld [vmem:[%s1493_s2 + $0x48] sm:$0xff]  ;;  %v291_v47 = vld [vmem:[%s1493_s2 + $0x1c0] sm:$0xff]  ;;  %v242_v52 = vld [vmem:[%s1493_s2 + $0x38] sm:$0xff]  ;;  %s869_s28 = sld [smem:[#allocation2 + $0x82]] }
  0x30   : > { %215 = vmax.xlane.f32.xlu0 %v214_v2  ;;  %v276_v45 = vld [vmem:[%s1493_s2 + $0x148] sm:$0xff]  ;;  %v243_v48 = vld [vmem:[%s1493_s2 + $0x40] sm:$0xff]  ;;  %v274_v53 = vld [vmem:[%s1493_s2 + $0x138] sm:$0xff]  ;;  %s863_s29 = sld [smem:[#allocation2 + $0x3]] }
  0x31   : > { %v275_v49 = vld [vmem:[%s1493_s2 + $0x140] sm:$0xff]  ;;  %v257_v54 = vld [vmem:[%s1493_s2 + $0xb0] sm:$0xff]  ;;  %v256_v58 = vld [vmem:[%s1493_s2 + $0xa8] sm:$0xff]  ;;  %s870_s30 = sld [smem:[#allocation2 + $0x83]] }
  0x32   : > { %v289_v55 = vld [vmem:[%s1493_s2 + $0x1b0] sm:$0xff]  ;;  %v288_v59 = vld [vmem:[%s1493_s2 + $0x1a8] sm:$0xff]  ;;  %v255_v62 = vld [vmem:[%s1493_s2 + $0xa0] sm:$0xff]  ;;  %s864_s5 = sld [smem:[#allocation2 + $0x4]] }
  0x33   : > { %v241_v56 = vld [vmem:[%s1493_s2 + $0x30] sm:$0xff]  ;;  %v240_v60 = vld [vmem:[%s1493_s2 + $0x28] sm:$0xff]  ;;  %v287_v63 = vld [vmem:[%s1493_s2 + $0x1a0] sm:$0xff]  ;;  %s1435_s6 = sld [smem:[#allocation2 + $0x84]] }
  0x34   : > { %v273_v57 = vld [vmem:[%s1493_s2 + $0x130] sm:$0xff]  ;;  %v272_v61 = vld [vmem:[%s1493_s2 + $0x128] sm:$0xff]  ;;  %v239_v1 = vld [vmem:[%s1493_s2 + $0x20] sm:$0xff]  ;;  %s1437_s7 = sld [smem:[#allocation2 + $0x5]] }
  0x35   : > { %v271_v2 = vld [vmem:[%s1493_s2 + $0x120] sm:$0xff]  ;;  %v254_v3 = vld [vmem:[%s1493_s2 + $0x98] sm:$0xff]  ;;  %v253_v7 = vld [vmem:[%s1493_s2 + $0x90] sm:$0xff] }
  0x36   : > { %v286_v4 = vld [vmem:[%s1493_s2 + $0x198] sm:$0xff]  ;;  %v285_v8 = vld [vmem:[%s1493_s2 + $0x190] sm:$0xff]  ;;  %v252_v11 = vld [vmem:[%s1493_s2 + $0x88] sm:$0xff] }
  0x37   : > { %v238_v5 = vld [vmem:[%s1493_s2 + $0x18] sm:$0xff]  ;;  %v237_v9 = vld [vmem:[%s1493_s2 + $0x10] sm:$0xff] }
  0x38   : > { %v270_v6 = vld [vmem:[%s1493_s2 + $0x118] sm:$0xff]  ;;  %v269_v10 = vld [vmem:[%s1493_s2 + $0x110] sm:$0xff] }
  0xb5   : > { %v211_v13 = vpop.xlane.xlu0 %210 }
  0xb6   : > { %v213_v15 = vmul.f32 0.0625, %v211_v13  ;;  %v284_v13 = vld [vmem:[%s1493_s2 + $0x188] sm:$0xff] }
  0xb8   : > { %v223_v17 = vrot.slane %v213_v15, %v222_v14  ;;  %v268_v15 = vld [vmem:[%s1493_s2 + $0x108] sm:$0xff] }
  0xb9   : > { %v216_v16 = vpop.xlane.xlu0 %215 }
  0xba   : > { %v229_v18 = vrot.slane %v216_v16, %v222_v14  ;;  %v236_v14 = vld [vmem:[%s1493_s2 + $0x8] sm:$0xff]  ;;  %v251_v16 = vld [vmem:[%s1493_s2 + $0x80] sm:$0xff] }
  0xbc   : > { %v232_v21 = vsel %vm231_vm2, %v223_v17, %v229_v18  ;;  %v283_v17 = vld [vmem:[%s1493_s2 + $0x180] sm:$0xff] }
  0xbd   : > { %856 = vmatmul.mubr.msk.f32.vlgmr.msra.gmra.mxu0 %vm303_vm3, %v232_v21  ;;  %859 = vmatmul.mubr.msk.f32.vlgmr.msra.gmra.mxu1 %vm303_vm3, %v232_v21  ;;  %v235_v18 = vld [vmem:[%s1493_s2] sm:$0xff] }
  0xbe   : > { %880 = vmatpush3.msra.mxu0 %v250_v19  ;;  %915 = vmatpush3.msra.mxu1 %v282_v20  ;;  %v267_v19 = vld [vmem:[%s1493_s2 + $0x100] sm:$0xff] }
  0xbf   : > { %881 = vmatprep.subr.mxu0 %v265_v22  ;;  %916 = vmatprep.subr.mxu1 %v297_v23 }
  0xc0   : > { %882 = vmatpush3.msra.mxu0 %v249_v24  ;;  %917 = vmatpush3.msra.mxu1 %v281_v25 }
  0xc1   : > { %883 = vmatprep.subr.mxu0 %v264_v26  ;;  %918 = vmatprep.subr.mxu1 %v296_v27 }
  0xc2   : > { %884 = vmatpush3.msra.mxu0 %v248_v28  ;;  %919 = vmatpush3.msra.mxu1 %v280_v29 }
  0xc3   : > { %885 = vmatprep.subr.mxu0 %v263_v30  ;;  %920 = vmatprep.subr.mxu1 %v295_v31 }
  0xc4   : > { %886 = vmatpush3.msra.mxu0 %v247_v32  ;;  %921 = vmatpush3.msra.mxu1 %v279_v33 }
  0xc5   : > { %887 = vmatprep.subr.mxu0 %v262_v34  ;;  %922 = vmatprep.subr.mxu1 %v294_v35 }
  0xc6   : > { %888 = vmatpush3.msra.mxu0 %v246_v36  ;;  %923 = vmatpush3.msra.mxu1 %v278_v37 }
  0xc7   : > { %889 = vmatprep.subr.mxu0 %v261_v38  ;;  %924 = vmatprep.subr.mxu1 %v293_v39 }
  0xc8   : > { %890 = vmatpush3.msra.mxu0 %v245_v40  ;;  %925 = vmatpush3.msra.mxu1 %v277_v41  ;;  %v614_v40 = vsub.s32 0, %v1220_v12 }
  0xc9   : > { %891 = vmatprep.subr.mxu0 %v260_v42  ;;  %926 = vmatprep.subr.mxu1 %v292_v43 }
  0xca   : > { %892 = vmatpush3.msra.mxu0 %v244_v44  ;;  %927 = vmatpush3.msra.mxu1 %v276_v45 }
  0xcb   : > { %893 = vmatprep.subr.mxu0 %v259_v46  ;;  %928 = vmatprep.subr.mxu1 %v291_v47 }
  0xcc   : > { %894 = vmatpush3.msra.mxu0 %v243_v48  ;;  %929 = vmatpush3.msra.mxu1 %v275_v49 }
  0xcd   : > { %895 = vmatprep.subr.mxu0 %v258_v50  ;;  %930 = vmatprep.subr.mxu1 %v290_v51 }
  0xce   : > { %896 = vmatpush3.msra.mxu0 %v242_v52  ;;  %931 = vmatpush3.msra.mxu1 %v274_v53 }
  0xcf   : > { %897 = vmatprep.subr.mxu0 %v257_v54  ;;  %932 = vmatprep.subr.mxu1 %v289_v55 }
  0xd0   : > { %898 = vmatpush3.msra.mxu0 %v241_v56  ;;  %933 = vmatpush3.msra.mxu1 %v273_v57 }
  0xd1   : > { %899 = vmatprep.subr.mxu0 %v256_v58  ;;  %934 = vmatprep.subr.mxu1 %v288_v59 }
  0xd2   : > { %900 = vmatpush3.msra.mxu0 %v240_v60  ;;  %935 = vmatpush3.msra.mxu1 %v272_v61 }
  0xd3   : > { %901 = vmatprep.subr.mxu0 %v255_v62  ;;  %936 = vmatprep.subr.mxu1 %v287_v63  ;;  %v656_v62 = vstv %s636_s14 }
  0xd4   : > { %902 = vmatpush3.msra.mxu0 %v239_v1  ;;  %937 = vmatpush3.msra.mxu1 %v271_v2  ;;  %v664_v1 = vstv %s867_s20 }
  0xd5   : > { %903 = vmatprep.subr.mxu0 %v254_v3  ;;  %938 = vmatprep.subr.mxu1 %v286_v4 }
  0xd6   : > { %904 = vmatpush3.msra.mxu0 %v238_v5  ;;  %939 = vmatpush3.msra.mxu1 %v270_v6  ;;  %v672_v5 = vstv %s861_s22 }
  0xd7   : > { %905 = vmatprep.subr.mxu0 %v253_v7  ;;  %940 = vmatprep.subr.mxu1 %v285_v8  ;;  %v679_v8 = vstv %s868_s23 }
  0xd8   : > { %906 = vmatpush3.msra.mxu0 %v237_v9  ;;  %941 = vmatpush3.msra.mxu1 %v269_v10 }
  0xd9   : > { %907 = vmatprep.subr.mxu0 %v252_v11  ;;  %942 = vmatprep.subr.mxu1 %v284_v13 }
  0xda   : > { %908 = vmatpush3.msra.mxu0 %v236_v14  ;;  %943 = vmatpush3.msra.mxu1 %v268_v15  ;;  %v687_v14 = vstv %s862_s27 }
  0xdb   : > { %909 = vmatprep.subr.mxu0 %v251_v16  ;;  %944 = vmatprep.subr.mxu1 %v283_v17 }
  0xdc   : > { %910 = vmatpush3.msra.mxu0 %v235_v18  ;;  %945 = vmatpush3.msra.mxu1 %v267_v19 }
 0x17d   : > { %v382_v20 = vpop.f32.mrf.mxu0  ;;  %v453_v21 = vpop.f32.mrf.mxu1 }
 0x17e   : > { %v458_v26 = vmax.f32 %v382_v20, 0.0  ;;  %v460_v27 = vmax.f32 %v453_v21, 0.0  ;;  %v694_v21 = vstv %s869_s28 }
 0x17f   : > { %v384_v22 = vpop.f32.mrf.mxu0  ;;  %v455_v23 = vpop.f32.mrf.mxu1 }
 0x180   : > { %v459_v24 = vmax.f32 %v384_v22, 0.0  ;;  %v461_v25 = vmax.f32 %v455_v23, 0.0  ;;  %v697_v23 = vstv %s863_s29 }
 0x182   : > { %526 = vmatprep.mubr.f32.mxu0 %v459_v24  ;;  %596 = vmatprep.mubr.f32.mxu1 %v461_v25 }
 0x183   : > { %527 = vmatmul.mubr.f32.vlgmr.msra.gmra.mxu0 %v458_v26  ;;  %597 = vmatmul.mubr.f32.vlgmr.msra.gmra.mxu1 %v460_v27  ;;  %v700_v27 = vstv %s870_s30 }
 0x243   : > { %v911_v28 = vpop.f32.mrf.mxu0  ;;  %v946_v29 = vpop.f32.mrf.mxu1 }
 0x245   : > { %v912_v30 = vpop.f32.mrf.mxu0  ;;  %v947_v31 = vpop.f32.mrf.mxu1 }
 0x246   : > { %v913_v32 = vadd.f32 %v912_v30, %v911_v28  ;;  %v948_v33 = vadd.f32 %v947_v31, %v946_v29 }
 0x248   : > { %v599_v34 = vadd.f32 %v948_v33, %v913_v32  ;;  %v708_v32 = vstv %s864_s5 }
 0x24a   : > { %v603_v35 = vrot.slane %v599_v34, 1 }
 0x24c   : > { %v605_v36 = vadd.f32 %v603_v35, %v599_v34 }
 0x24e   : > { %v860_v37 = vmul.f32 -1.442695, %v605_v36  ;;  %v715_v36 = vstv %s1435_s6 }
 0x250   : > { %1008 = vpow2.f32 %v860_v37 }
 0x25d   : > { %v1009_v38 = vpop.eup %1008 }
 0x25e   : > { %v609_v39 = vadd.f32 1.0, %v1009_v38 }
 0x260   : > { %1010 = vrcp.f32 %v609_v39 }
 0x26d   : > { %v1011_v41 = vpop.eup %1010 }
 0x26e   : > { %v615_v42 = vrot.slane %v1011_v41, %v614_v40  ;;  %v723_v41 = vstv %s1437_s7 }
 0x270   : > { %617 = vbcast.lane.b32.xlu1 %v615_v42, 256 }
 0x2e2   : > { %v618_v43 = vpop.permute.xlu1 %617 }
 0x2e3   : > { %v1413_v44 = vmul.f32 %v618_v43, %v1202_v0 }
 0x2e5   : > { %v620_v45 = vsel %vm208_vm0, %v1413_v44, 0.0  ;;  %v629_v46 = vsel %vm208_vm0, %v1413_v44, -inf }
 0x2e6   : > { %v621_v47 = vrot.slane %v620_v45, 4  ;;  %v630_v48 = vrot.slane %v629_v46, 4 }
 0x2e8   : > { %v622_v49 = vadd.f32 %v621_v47, %v620_v45  ;;  %v631_v50 = vmax.f32 %v629_v46, %v630_v48 }
 0x2ea   : > { %v623_v51 = vrot.slane %v622_v49, 2  ;;  %v632_v52 = vrot.slane %v631_v50, 2 }
 0x2ec   : > { %v624_v53 = vadd.f32 %v623_v51, %v622_v49  ;;  %v633_v54 = vmax.f32 %v631_v50, %v632_v52 }
 0x2ee   : > { %v625_v55 = vrot.slane %v624_v53, 1  ;;  %v634_v56 = vrot.slane %v633_v54, 1 }
 0x2f0   : > { %v626_v57 = vadd.f32 %v625_v55, %v624_v53  ;;  %v1419_v58 = vmax.f32 %v633_v54, %v634_v56 }
 0x2f2   : > { %675 = vrot.lane.b32.xlu1 %v1419_v58, %s1099_s8  ;;  %660 = vrot.lane.b32.xlu0 %v1419_v58, %s1100_s9  ;;  %v1423_v59 = vmul.f32 0.25, %v626_v57  ;;  %v701_v35 = vmul.f32 %v700_v27, %v1419_v58 }
 0x2f4   : > { %v698_v30 = vmul.f32 %v697_v23, %v1423_v59 }
 0x2f6   : > { %718 = vrot.lane.b32.xlu0 %v1423_v59, %s1101_s10  ;;  %651 = vrot.lane.b32.xlu1 %v1423_v59, %s1100_s9  ;;  %s866_s9 = sld [smem:[#allocation2 + $0x6]] }
 0x2fa   : > { %733 = vrot.lane.b32.xlu0 %v1423_v59, %s1102_s11  ;;  %667 = vrot.lane.b32.xlu1 %v1423_v59, %s1099_s8  ;;  %s1439_s8 = sld [smem:[#allocation2 + $0x85]] }
 0x2fc   : > { %v738_v52 = vstv %s866_s9 }
 0x2fe   : > { %682 = vrot.lane.b32.xlu1 %v1423_v59, %s1103_s12 }
 0x300   : > { %v730_v48 = vstv %s1439_s8 }
 0x302   : > { %690 = vrot.lane.b32.xlu1 %v1419_v58, %s1103_s12 }
 0x306   : > { %703 = vrot.lane.b32.xlu1 %v1423_v59, %s1104_s13 }
 0x30a   : > { %711 = vrot.lane.b32.xlu1 %v1419_v58, %s1104_s13  ;;  %s876_s13 = sshll.u32 %s1152_s19, 6  ;;  %s1105_s19 = smov [#allocation5]  }
 0x30b   : > { %s773_s27 = scalar_lea.hbm %s1495_s4, %s876_s13  ;;  %s1035_s30 = sshll.u32 %s1105_s19, 4  ;;  %s1036_s30 = int_to_ptr.vmem [resolvable:$false] %s1035_s30 }
 0x30c   : > { %s1037_s5 = scalar_lea.vmem %s1036_s30, 128 }
 0x30e   : > { %726 = vrot.lane.b32.xlu1 %v1419_v58, %s1101_s10  ;;  %s873_s10 = sld [smem:[#allocation2 + $0x86]] }
 0x312   : > { %741 = vrot.lane.b32.xlu1 %v1419_v58, %s1102_s11  ;;  %s200_s11 = sand.u32 1, %s1087_s16  }
 0x313   : > { %s852_s12 = sshll.u32 %s200_s11, 2  ;;  %s762_s28 = scalar_lea.sflag [#allocation3], %s200_s11 }
 0x314   : > { %v745_v57 = vstv %s873_s10  ;;  %s202_s14 = scalar_lea.vmem [#allocation5], %s852_s12 }
 0x315   : > { %s775_s20 = sshll.u32 %s202_s14, 4  ;;  %s776_s20 = int_to_ptr.vmem [resolvable:$true] %s775_s20 }
 0x316   : > { %s1031_s29 = scalar_lea.vmem %s776_s20, 64  ;;  %p1038_p13 = scmp.lt.s32.totalorder %s776_s20, %s1036_s30 }
 0x317   : > { %p1032_p9 = scmp.ne.s32.totalorder %s776_s20, %s1031_s29  ;;  %p1039_p0 = scmp.lt.s32.totalorder %s1037_s5, %s1031_s29 }
 0x319   : > { %p1033_p10 = pnand %p1032_p9, %p1169_p5  ;;  %p1040_p1 = por %p1039_p0, %p1038_p13 }
 0x31b   : > { %p1034_p12 = pneg %p1033_p10 }
 0x31d   : > { %p1041_p2 = pnand %p1040_p1, %p1034_p12 }
 0x364   : > { %v676_v60 = vpop.permute.xlu1 %675  ;;  %v661_v61 = vpop.permute.xlu0 %660 }
 0x365   : > { %v663_v2 = vsel %vm654_vm4, 0.0, %v661_v61  ;;  %v678_v9 = vsel %vm670_vm5, 0.0, %v676_v60 }
 0x366   : > { %v665_v6 = vmul.f32 %v664_v1, %v663_v2  ;;  %v680_v15 = vmul.f32 %v679_v8, %v678_v9 }
 0x368   : > { %v652_v63 = vpop.permute.xlu1 %651  ;;  %v719_v28 = vpop.permute.xlu0 %718 }
 0x369   : > { %v655_v3 = vsel %vm654_vm4, 0.0, %v652_v63  ;;  %v722_v42 = vsel %vm721_vm8, %v719_v28, 0.0 }
 0x36a   : > { %v657_v4 = vmul.f32 %v656_v62, %v655_v3  ;;  %v724_v49 = vmul.f32 %v723_v41, %v722_v42 }
 0x36c   : > { %v668_v7 = vpop.permute.xlu1 %667  ;;  %v666_v11 = vadd.f32 %v665_v6, %v657_v4  ;;  %v734_v45 = vpop.permute.xlu0 %733 }
 0x36d   : > { %v671_v10 = vsel %vm670_vm5, 0.0, %v668_v7  ;;  %v737_v53 = vsel %vm736_vm9, %v734_v45, 0.0 }
 0x36e   : > { %v673_v13 = vmul.f32 %v672_v5, %v671_v10  ;;  %v739_v58 = vmul.f32 %v738_v52, %v737_v53 }
 0x370   : > { %v674_v16 = vadd.f32 %v673_v13, %v666_v11  ;;  %v683_v17 = vpop.permute.xlu1 %682 }
 0x371   : > { %v686_v18 = vsel %vm685_vm6, 0.0, %v683_v17 }
 0x372   : > { %v681_v19 = vadd.f32 %v680_v15, %v674_v16  ;;  %v688_v20 = vmul.f32 %v687_v14, %v686_v18 }
 0x374   : > { %v691_v22 = vpop.permute.xlu1 %690  ;;  %v689_v25 = vadd.f32 %v688_v20, %v681_v19 }
 0x375   : > { %v693_v24 = vsel %vm685_vm6, 0.0, %v691_v22 }
 0x376   : > { %v695_v26 = vmul.f32 %v694_v21, %v693_v24 }
 0x378   : > { %v696_v29 = vadd.f32 %v695_v26, %v689_v25  ;;  %v704_v31 = vpop.permute.xlu1 %703 }
 0x379   : > { %v707_v33 = vsel %vm706_vm7, %v704_v31, 0.0 }
 0x37a   : > { %v699_v34 = vadd.f32 %v698_v30, %v696_v29  ;;  %v709_v38 = vmul.f32 %v708_v32, %v707_v33 }
 0x37c   : > { %v702_v37 = vadd.f32 %v701_v35, %v699_v34  ;;  %v712_v39 = vpop.permute.xlu1 %711 }
 0x37d   : > { %v714_v43 = vsel %vm706_vm7, %v712_v39, 0.0 }
 0x37e   : > { %v710_v46 = vadd.f32 %v709_v38, %v702_v37  ;;  %v716_v47 = vmul.f32 %v715_v36, %v714_v43 }
 0x380   : > { %v717_v50 = vadd.f32 %v716_v47, %v710_v46  ;;  %v727_v51 = vpop.permute.xlu1 %726 }
 0x381   : > { %v729_v54 = vsel %vm721_vm8, %v727_v51, 0.0 }
 0x382   : > { %v725_v55 = vadd.f32 %v724_v49, %v717_v50  ;;  %v731_v56 = vmul.f32 %v730_v48, %v729_v54 }
 0x384   : > { %v732_v59 = vadd.f32 %v731_v56, %v725_v55  ;;  %v742_v60 = vpop.permute.xlu1 %741 }
 0x385   : > { %v744_v61 = vsel %vm736_vm9, %v742_v60, 0.0 }
 0x386   : > { %v740_v62 = vadd.f32 %v739_v58, %v732_v59  ;;  %v746_v63 = vmul.f32 %v745_v57, %v744_v61 }
 0x388   : > { %v747_v1 = vadd.f32 %v746_v63, %v740_v62 }
 0x38a   : > { %v874_v2 = vmul.f32 -1.442695, %v747_v1 }
 0x38c   : > { %1012 = vpow2.f32 %v874_v2 }
 0x399   : > { %v1013_v3 = vpop.eup %1012 }
 0x39a   : > { %v751_v4 = vadd.f32 1.0, %v1013_v3 }
 0x39c   : > { %1014 = vrcp.f32 %v751_v4 }
 0x3a9   : > { %v1015_v5 = vpop.eup %1014 }
 0x3aa   : > { %v757_v6 = vrot.slane %v1015_v5, %v614_v40 }
 0x3ac   : > { %v758_v7 = vmul.f32 %v757_v6, %v1413_v44 }
 0x3ae   : > { %v759_v8 = vmul.f32 %v758_v7, %v1202_v0 }
 0x3b0   : > { %760 = vst.msk [vmem:[%s202_s14] sm:$0xf] %vm208_vm0, %v759_v8 }
 0x3b1   : > { %1044 = shalt.err (!%p1041_p2)
}
 0x3b2   : > { %s1045_s6 = scalar_lea.hbm %s773_s27, 64  ;;  %s1049_s9 = scalar_lea.hbm %s1495_s4, 128 }
 0x3b3   : > { %p1046_p3 = scmp.ne.s32.totalorder %s773_s27, %s1045_s6  ;;  %p1050_p8 = scmp.lt.s32.totalorder %s773_s27, %s1495_s4 }
 0x3b4   : > { %p1051_p11 = scmp.lt.s32.totalorder %s1049_s9, %s1045_s6 }
 0x3b5   : > { %p1047_p4 = pnand %p1046_p3, %p1169_p5 }
 0x3b6   : > { %p1052_p9 = por %p1051_p11, %p1050_p8 }
 0x3b7   : > { %p1048_p7 = pneg %p1047_p4 }
 0x3b9   : > { %p1053_p10 = pnand %p1052_p9, %p1048_p7 }
 0x3bb   : > { %1056 = shalt.err (!%p1053_p10)
}
 0x3bc   : > { %953 = dma.vmem_to_hbm [thread:$0]  (%p1169_p5), %s776_s20, 64, %s773_s27, %s762_s28  }
 0x3bd PF: > { %p965_p12 = scmp.ge.s32.totalorder %s1095_s18, 2  ;;  %s787_s12 = sand.u32 1, %s1083_s15  }
 0x3be   : > { %s788_s13 = scalar_lea.sflag [#allocation3], %s787_s12 }
 0x3bf   : > { %p960_p13 = pnand %p965_p12, %p1173_p6 }
 0x3c1   : > { %p961_p0 = pneg %p960_p13 }
 0x3c3   : > { %1078 = dma.done.wait (%p961_p0), %s788_s13, 64  }
 0x3c4   : > { %1080 = vsyncadd (%p961_p0), %s788_s13, 4294967232  ;;  %p15_p1 = scmp.ge.s32.totalorder %s1156_s21, 4   ;;  %s1499_s15 = smov %s1087_s16 }
 0x3c5   : > { %s1500_s16 = smov %s1091_s17  ;;  %s1501_s17 = smov %s1167_s24 }
 0x3c6   : > { %s1502_s18 = smov %s1156_s21  ;;  %17 = sbr.rel (!%p15_p1) target bundleno = 4 (0x4), region = 76 }
 0x3cb   :  { %793 = vsyncpa [#allocation3], 1 }
 0x3cc   :  { %795 = vsyncpa [#allocation3 + $0x1], 1 }
 0x3cd   :  { %796 = vsyncpa [#allocation4], 1 }
 0x3ce   :  { %798 = vsyncpa [#allocation4 + $0x1], 1 }

</bundles_post_ra>
